<compile_context>
chip_gen: v5e
topology: v5e:2x2
jax: 0.10.0
libtpu: 0.0.40
codegen_flags: <defaults>
</compile_context>

<pallas_src>
import functools

import jax
import jax.numpy as jnp
from jax.experimental import pallas as pl
from jax.experimental.pallas import tpu as pltpu


def _seq_decoder_kernel(x_ref, w1t_ref, b1_ref, w2_ref, b2_ref, out_ref, *,
                        pool_kernel):
    # x_ref:   (TB*S, D)  bf16  flattened batch tile
    # w1t_ref: (D, C)     bf16  dense1 weight, pre-transposed
    # b1_ref:  (1, C)     f32   dense1 bias
    # w2_ref:  (P, 1)     f32   dense2 weight (column form, P = S // pool_kernel)
    # b2_ref:  (1, 1)     f32   dense2 bias
    # out_ref: (TB, C)    f32
    TB, C = out_ref.shape
    D = x_ref.shape[1]
    S = x_ref.shape[0] // TB
    P = w2_ref.shape[0]
    k = pool_kernel

    # dense1: one MXU matmul over all TB*S rows, f32 accumulation.
    h = jnp.dot(x_ref[...], w1t_ref[...],
                preferred_element_type=jnp.float32)            # (TB*S, C)
    h = h + b1_ref[...]

    # dropout is identity at inference time (nn.Dropout in eval mode).

    # MaxPool1d(kernel=stride=pool_kernel) over the seq axis, with PyTorch-style
    # truncation of trailing elements: reshape + single reduction.
    h = h.reshape(TB, S, C)[:, :P * k, :]
    pooled = jnp.max(h.reshape(TB, P, k, C), axis=2)           # (TB, P, C)

    # dense2 (in_features=P, out_features=1) on VPU/XLU:
    # out[b, c] = sum_p pooled[b, p, c] * w2[p] + b2
    out = jnp.sum(pooled * w2_ref[...], axis=1) + b2_ref[...]  # (TB, C)
    out_ref[...] = out.astype(out_ref.dtype)


def seq_decoder_forward(x, w1, b1, w2, b2, pool_kernel, *, batch_block=None):
    """x: (B, S, D); w1: (C, D); b1: (C,); w2: (1, P); b2: (1,). Returns (B, C)."""
    B, S, D = x.shape
    C = w1.shape[0]
    P = S // pool_kernel
    assert w2.shape == (1, P), (w2.shape, P)

    TB = B if batch_block is None else batch_block
    assert B % TB == 0, "batch_block must divide B"
    nb = B // TB

    # bf16 MXU operands (halves HBM->VMEM bytes for the dominant input),
    # f32 biases / dense2 weight.
    x2d = jnp.asarray(x, jnp.bfloat16).reshape(B * S, D)
    w1t = jnp.asarray(w1, jnp.bfloat16).T               # (D, C)
    b1r = jnp.asarray(b1, jnp.float32).reshape(1, C)
    w2c = jnp.asarray(w2, jnp.float32).reshape(P, 1)    # column form for VPU path
    b2r = jnp.asarray(b2, jnp.float32).reshape(1, 1)

    kernel = functools.partial(_seq_decoder_kernel, pool_kernel=pool_kernel)

    return pl.pallas_call(
        kernel,
        out_shape=jax.ShapeDtypeStruct((B, C), jnp.float32),
        grid_spec=pltpu.PrefetchScalarGridSpec(
            num_scalar_prefetch=0,
            grid=(nb,),
            in_specs=[
                pl.BlockSpec((TB * S, D), lambda i: (i, 0)),
                pl.BlockSpec((D, C), lambda i: (0, 0)),
                pl.BlockSpec((1, C), lambda i: (0, 0)),
                pl.BlockSpec((P, 1), lambda i: (0, 0)),
                pl.BlockSpec((1, 1), lambda i: (0, 0)),
            ],
            out_specs=pl.BlockSpec((TB, C), lambda i: (i, 0)),
        ),
        compiler_params=pltpu.CompilerParams(
            dimension_semantics=("parallel",)),
    )(x2d, w1t, b1r, w2c, b2r)


def seq_decoder_reference(x, w1, b1, w2, b2, pool_kernel):
    """Pure-JAX reference mirroring the PyTorch forward."""
    h = jnp.einsum("bsd,cd->bsc", x, w1) + b1               # dense1
    ht = jnp.swapaxes(h, -1, -2)                            # (B, C, S)
    B, C, S = ht.shape
    P = S // pool_kernel
    pooled = jnp.max(
        ht[:, :, :P * pool_kernel].reshape(B, C, P, pool_kernel), axis=-1)
    out = jnp.einsum("bcp,op->bco", pooled, w2) + b2        # dense2 -> (B, C, 1)
    return out[..., 0]                                      # squeeze(-1)


if __name__ == "__main__":
    # Small, deterministic shapes consistent with the module.
    B, S, D = 2, 8, 32          # batch, seq_len, d_model
    C = 16                      # out_size
    pool_kernel = 4             # P = seq_len // pool_kernel = 2
    P = S // pool_kernel

    key = jax.random.PRNGKey(0)
    kx, kw1, kb1, kw2, kb2 = jax.random.split(key, 5)
    x  = jax.random.normal(kx,  (B, S, D), jnp.float32)
    w1 = jax.random.normal(kw1, (C, D), jnp.float32) * 0.1   # dense1.weight
    b1 = jax.random.normal(kb1, (C,), jnp.float32) * 0.1     # dense1.bias
    w2 = jax.random.normal(kw2, (1, P), jnp.float32) * 0.1   # dense2.weight
    b2 = jax.random.normal(kb2, (1,), jnp.float32) * 0.1     # dense2.bias

    out = seq_decoder_forward(x, w1, b1, w2, b2, pool_kernel)
    out = jax.block_until_ready(out)

    # Kernel feeds bf16 operands to the MXU (f32 accumulation), so compare
    # tightly against a bf16-matched reference and loosely against pure f32.
    x_bf  = x.astype(jnp.bfloat16).astype(jnp.float32)
    w1_bf = w1.astype(jnp.bfloat16).astype(jnp.float32)
    ref_bf  = seq_decoder_reference(x_bf, w1_bf, b1, w2, b2, pool_kernel)
    ref_f32 = seq_decoder_reference(x, w1, b1, w2, b2, pool_kernel)

    assert out.shape == (B, C), out.shape
    assert jnp.allclose(out, ref_bf, atol=1e-3, rtol=1e-3), "mismatch vs bf16-matched reference"
    assert jnp.allclose(out, ref_f32, atol=5e-2, rtol=5e-2), "mismatch vs f32 reference"

    print("KERNEL_OK")
</pallas_src>

<mosaic_0001>
module attributes {stable_mosaic.version = 11 : i64} {
  func.func @_seq_decoder_kernel(%arg0: i32, %arg1: memref<16x32xbf16, #tpu.memory_space<vmem>>, %arg2: memref<32x16xbf16, #tpu.memory_space<vmem>>, %arg3: memref<1x16xf32, #tpu.memory_space<vmem>>, %arg4: memref<2x1xf32, #tpu.memory_space<vmem>>, %arg5: memref<1x1xf32, #tpu.memory_space<vmem>>, %arg6: memref<2x16xf32, #tpu.memory_space<vmem>>) attributes {dimension_semantics = [#tpu.dimension_semantics<parallel>], iteration_bounds = array<i64: 1>, scalar_prefetch = 0 : i64, scratch_operands = 0 : i64, tpu.core_type = #tpu.core_type<tc>, window_params = [{transform_indices = @transform_0, window_bounds = array<i64: 16, 32>}, {pipeline_mode = #tpu.pipeline_mode<synchronous>, transform_indices = @transform_1, window_bounds = array<i64: 32, 16>}, {pipeline_mode = #tpu.pipeline_mode<synchronous>, transform_indices = @transform_2, window_bounds = array<i64: 1, 16>}, {pipeline_mode = #tpu.pipeline_mode<synchronous>, transform_indices = @transform_3, window_bounds = array<i64: 2, 1>}, {pipeline_mode = #tpu.pipeline_mode<synchronous>, transform_indices = @transform_4, window_bounds = array<i64: 1, 1>}, {transform_indices = @transform_5, window_bounds = array<i64: 2, 16>}]} {
    %c0 = arith.constant 0 : index
    %c0_0 = arith.constant 0 : index
    %0 = vector.load %arg1[%c0, %c0_0] : memref<16x32xbf16, #tpu.memory_space<vmem>>, vector<16x32xbf16>
    %c0_1 = arith.constant 0 : index
    %c0_2 = arith.constant 0 : index
    %1 = vector.load %arg2[%c0_1, %c0_2] : memref<32x16xbf16, #tpu.memory_space<vmem>>, vector<32x16xbf16>
    %cst = arith.constant dense<0.000000e+00> : vector<16x16xf32>
    %2 = tpu.matmul %0, %1, %cst {dimension_numbers = #tpu.dot_dimension_numbers<[1], [0], [0], [1], [0, 0, 1, 1], [], []>} : vector<16x32xbf16>, vector<32x16xbf16>, vector<16x16xf32> -> vector<16x16xf32>
    %c0_3 = arith.constant 0 : index
    %c0_4 = arith.constant 0 : index
    %3 = vector.load %arg3[%c0_3, %c0_4] : memref<1x16xf32, #tpu.memory_space<vmem>>, vector<1x16xf32>
    %4 = vector.broadcast %3 : vector<1x16xf32> to vector<16x16xf32>
    %5 = arith.addf %2, %4 : vector<16x16xf32>
    %6 = vector.shape_cast %5 : vector<16x16xf32> to vector<2x8x16xf32>
    %7 = vector.shape_cast %6 : vector<2x8x16xf32> to vector<2x2x4x16xf32>
    %cst_5 = arith.constant dense<0xFF800000> : vector<2x2x16xf32>
    %8 = vector.multi_reduction <maximumf>, %7, %cst_5 [2] : vector<2x2x4x16xf32> to vector<2x2x16xf32>
    %c0_6 = arith.constant 0 : index
    %c0_7 = arith.constant 0 : index
    %9 = vector.load %arg4[%c0_6, %c0_7] : memref<2x1xf32, #tpu.memory_space<vmem>>, vector<2x1xf32>
    %10 = vector.shape_cast %9 : vector<2x1xf32> to vector<1x2x1xf32>
    %11 = vector.broadcast %10 : vector<1x2x1xf32> to vector<2x2x16xf32>
    %12 = arith.mulf %8, %11 : vector<2x2x16xf32>
    %cst_8 = arith.constant dense<0.000000e+00> : vector<2x16xf32>
    %13 = vector.multi_reduction <add>, %12, %cst_8 [1] : vector<2x2x16xf32> to vector<2x16xf32>
    %c0_9 = arith.constant 0 : index
    %c0_10 = arith.constant 0 : index
    %14 = vector.load %arg5[%c0_9, %c0_10] : memref<1x1xf32, #tpu.memory_space<vmem>>, vector<1x1xf32>
    %15 = vector.broadcast %14 : vector<1x1xf32> to vector<2x16xf32>
    %16 = arith.addf %13, %15 : vector<2x16xf32>
    %c0_11 = arith.constant 0 : index
    %c0_12 = arith.constant 0 : index
    %17 = vector.load %arg6[%c0_11, %c0_12] : memref<2x16xf32, #tpu.memory_space<vmem>>, vector<2x16xf32>
    tpu.vector_store %arg6[%c0_11, %c0_12], %16 {strides = array<i32>} : memref<2x16xf32, #tpu.memory_space<vmem>>, vector<2x16xf32>,
    return
  }
  func.func @transform_0(%arg0: i32) -> (i32, i32) {
    %c0_i32 = arith.constant 0 : i32
    %c0_i32_0 = arith.constant 0 : i32
    return %arg0, %c0_i32 : i32, i32
  }
  func.func @transform_1(%arg0: i32) -> (i32, i32) {
    %c0_i32 = arith.constant 0 : i32
    %c0_i32_0 = arith.constant 0 : i32
    %c0_i32_1 = arith.constant 0 : i32
    return %c0_i32, %c0_i32_0 : i32, i32
  }
  func.func @transform_2(%arg0: i32) -> (i32, i32) {
    %c0_i32 = arith.constant 0 : i32
    %c0_i32_0 = arith.constant 0 : i32
    %c0_i32_1 = arith.constant 0 : i32
    return %c0_i32, %c0_i32_0 : i32, i32
  }
  func.func @transform_3(%arg0: i32) -> (i32, i32) {
    %c0_i32 = arith.constant 0 : i32
    %c0_i32_0 = arith.constant 0 : i32
    %c0_i32_1 = arith.constant 0 : i32
    return %c0_i32, %c0_i32_0 : i32, i32
  }
  func.func @transform_4(%arg0: i32) -> (i32, i32) {
    %c0_i32 = arith.constant 0 : i32
    %c0_i32_0 = arith.constant 0 : i32
    %c0_i32_1 = arith.constant 0 : i32
    return %c0_i32, %c0_i32_0 : i32, i32
  }
  func.func @transform_5(%arg0: i32) -> (i32, i32) {
    %c0_i32 = arith.constant 0 : i32
    %c0_i32_0 = arith.constant 0 : i32
    return %arg0, %c0_i32 : i32, i32
  }
}

</mosaic_0001>

<bundles_post_ra>
// kernel: tpu_custom_call.1
= control target key start
LH: loop header
LB: loop body
LE: loop exit
PB: predicated region body
PF: predicated region fallthrough
CT: control target
= control target key end

     0   :  { %s283_s0 = inlined_call_operand.vmem [shape: bf16[16,32], index: 0, kind: input, shape index: {}]   ;;  %s284_s1 = inlined_call_operand.vmem [shape: bf16[32,16], index: 1, kind: input, shape index: {}]   ;;  %s285_s2 = inlined_call_operand.vmem [shape: f32[1,16], index: 2, kind: input, shape index: {}]   ;;  %s286_s3 = inlined_call_operand.vmem [shape: f32[2,1], index: 3, kind: input, shape index: {}]   ;;  %s287_s4 = inlined_call_operand.<no memory space> [shape: f32[1,1], index: 4, kind: input, shape index: {}]   ;;  %s288_s5 = inlined_call_operand.hbm [shape: f32[2,16], index: 5, kind: output, shape index: {}]  }
   0x1   :  { %v10_v0 = vstv %s287_s4 }
   0x2   :  { %11 = vst [vmem:[#allocation2] sm:$0x1] %v10_v0 }
   0x3   :  { %v188_v1 = vld [vmem:[%s284_s1 + $0x8] sm:$0xff]  ;;  %v220_v2 = vmov 0   ;;  %v104_v3 = vld [vmem:[%s286_s3] sm:$0x3] }
   0x4   :  { %191 = vset.pattern.permute.xlu0 %v220_v2  ;;  %61 = vmatpush.bf16.msra.mxu0 %v188_v1  ;;  %v187_v4 = vld [vmem:[%s284_s1] sm:$0xff] }
   0x5   :  { %107 = vperm.xlu0 %191, %v104_v3  }
   0x6   :  { %12 = vsyncpa [#allocation4], 0  ;;  %v186_v5 = vld [vmem:[%s283_s0] sm:$0xff]  ;;  %vm51_vm0 = vcmask 261120   ;;  %vm75_vm1 = vcmask 125952   ;;  %vm121_vm2 = vcmask 1041409  }
   0x7   :  { %v193_v7 = vld [vmem:[%s285_s2] ss:$0 sm:$0xff]  ;;  %vm127_vm3 = vcmask 123904   ;;  %s221_s0 = smov [#allocation3]   ;;  %s164_s29 = sshll.u32 %s288_s5, 4  ;;  %s165_s29 = int_to_ptr.hbm [resolvable:$true] %s164_s29 }
   0x8   :  { %62 = vmatpush.bf16.msra.mxu0 %v187_v4  ;;  %s162_s1 = sshll.u32 %s221_s0, 4  ;;  %s163_s1 = int_to_ptr.vmem [resolvable:$true] %s162_s1 }
   0x9   :  { %v192_v6 = vld [vmem:[#allocation2] ss:$0 sm:$0xff] }
   0xb   :  { %185 = vmatmul.msk.bf16.vlgmr.msra.gmra.mxu0 %vm51_vm0, %v186_v5 }
   0xd   :  { %146 = vperm.xlu0 %191, %v192_v6  }
  0x77   :  { %v108_v24 = vpop.permute.xlu0 %107 }
  0x78   :  { %v109_v32 = vrot.slane %v108_v24, 1 }
  0x7f   :  { %v147_v2 = vpop.permute.xlu0 %146 }
  0x88   :  { %v64_v8 = vpop.f32.mrf.mxu0 }
  0x89   :  { %v65_v9 = vadd.f32 %v193_v7, %v64_v8 }
  0x8b   :  { %v71_v10 = vrot.slane %v65_v9, 4  ;;  %v76_v11 = vsel %vm75_vm1, %v65_v9, -inf }
  0x8c   :  { %v77_v12 = vrot.slane %v76_v11, 4 }
  0x8d   :  { %v83_v13 = vsel %vm75_vm1, %v71_v10, -inf }
  0x8e   :  { %v78_v14 = vmax.f32 %v76_v11, %v77_v12  ;;  %v84_v15 = vrot.slane %v83_v13, 4 }
  0x90   :  { %v79_v16 = vrot.slane %v78_v14, 2  ;;  %v85_v17 = vmax.f32 %v83_v13, %v84_v15  ;;  %v66_v18 = vpop.f32.mrf.mxu0 }
  0x91   :  { %v67_v19 = vadd.f32 %v193_v7, %v66_v18 }
  0x92   :  { %v80_v20 = vmax.f32 %v78_v14, %v79_v16  ;;  %v86_v21 = vrot.slane %v85_v17, 2 }
  0x93   :  { %v72_v22 = vrot.slane %v67_v19, 4  ;;  %v90_v23 = vsel %vm75_vm1, %v67_v19, -inf }
  0x94   :  { %v87_v25 = vmax.f32 %v85_v17, %v86_v21  ;;  %v91_v26 = vrot.slane %v90_v23, 4  ;;  %v81_v27 = vrot.slane %v80_v20, 1 }
  0x95   :  { %v97_v28 = vsel %vm75_vm1, %v72_v22, -inf }
  0x96   :  { %v92_v29 = vmax.f32 %v90_v23, %v91_v26  ;;  %v98_v30 = vrot.slane %v97_v28, 4  ;;  %v88_v31 = vrot.slane %v87_v25, 1  ;;  %v82_v35 = vmax.f32 %v80_v20, %v81_v27 }
  0x98   :  { %v93_v33 = vrot.slane %v92_v29, 2  ;;  %v99_v34 = vmax.f32 %v97_v28, %v98_v30  ;;  %v89_v36 = vmax.f32 %v87_v25, %v88_v31  ;;  %v112_v42 = vmul.f32 %v108_v24, %v82_v35 }
  0x9a   :  { %v94_v37 = vmax.f32 %v92_v29, %v93_v33  ;;  %v100_v38 = vrot.slane %v99_v34, 2  ;;  %v113_v39 = vmul.f32 %v109_v32, %v89_v36 }
  0x9c   :  { %v101_v40 = vmax.f32 %v99_v34, %v100_v38  ;;  %v95_v41 = vrot.slane %v94_v37, 1  ;;  %v120_v43 = vrot.slane %v113_v39, 7 }
  0x9e   :  { %v102_v44 = vrot.slane %v101_v40, 1  ;;  %v122_v45 = vsel %vm121_vm2, %v120_v43, %v112_v42  ;;  %v96_v47 = vmax.f32 %v94_v37, %v95_v41 }
  0x9f   :  { %v128_v46 = vsel %vm127_vm3, %v122_v45, 0.0 }
  0xa0   :  { %v103_v48 = vmax.f32 %v101_v40, %v102_v44  ;;  %v129_v49 = vrot.slane %v128_v46, 4  ;;  %v114_v52 = vmul.f32 %v108_v24, %v96_v47 }
  0xa2   :  { %v115_v50 = vmul.f32 %v109_v32, %v103_v48  ;;  %v130_v51 = vadd.f32 %v129_v49, %v128_v46 }
  0xa4   :  { %v123_v53 = vrot.slane %v115_v50, 7  ;;  %v131_v55 = vrot.slane %v130_v51, 2 }
  0xa6   :  { %v124_v54 = vsel %vm121_vm2, %v123_v53, %v114_v52  ;;  %v132_v58 = vadd.f32 %v131_v55, %v130_v51 }
  0xa7   :  { %v135_v56 = vsel %vm127_vm3, %v124_v54, 0.0 }
  0xa8   :  { %v136_v57 = vrot.slane %v135_v56, 4  ;;  %v133_v61 = vrot.slane %v132_v58, 1 }
  0xaa   :  { %v137_v59 = vadd.f32 %v136_v57, %v135_v56  ;;  %v134_v0 = vadd.f32 %v133_v61, %v132_v58 }
  0xac   :  { %v138_v60 = vrot.slane %v137_v59, 2  ;;  %v149_v4 = vadd.f32 %v147_v2, %v134_v0 }
  0xae   :  { %v139_v62 = vadd.f32 %v138_v60, %v137_v59 }
  0xb0   :  { %v140_v63 = vrot.slane %v139_v62, 1 }
  0xb2   :  { %v141_v1 = vadd.f32 %v140_v63, %v139_v62 }
  0xb4   :  { %v150_v3 = vadd.f32 %v147_v2, %v141_v1 }
  0xb6   :  { %v153_v5 = vrot.slane %v150_v3, 7 }
  0xb8   :  { %v154_v6 = vsel %vm121_vm2, %v153_v5, %v149_v4 }
  0xb9   :  { %156 = vst.msk [vmem:[#allocation3] sm:$0x3] %vm127_vm3, %v154_v6 }
  0xba   :  { %167 = dma.vmem_to_hbm [thread:$0]  %s163_s1, 32, %s165_s29, [#allocation4]  }
  0xbb   :  { %218 = dma.done.wait [#allocation4], 32  }
  0xbc   :  { %219 = vsyncadd [#allocation4], 4294967264 }
  0xbd   :  { %172 = vsyncpa [#allocation4], 1 }

</bundles_post_ra>
